<compile_context>
chip_gen: v5e
topology: v5e:2x2
jax: 0.10.0
libtpu: 0.0.40
codegen_flags: <defaults>
</compile_context>

<pallas_src>
import functools

import jax
import jax.numpy as jnp
from jax.experimental import pallas as pl
from jax.experimental.pallas import tpu as pltpu

_NEG_INF = -1e30   # finite "-inf": keeps 0 * pad_logit == -0.0 (no NaN)
_LANE = 128
_SUB = 8


def _round_up(n, m):
    return ((n + m - 1) // m) * m


def _multimodn_kernel(xt_ref, p1_ref, p2_ref, s0_ref,
                      loss_ref, pred_ref, state_out_ref, *, meta):
    """Single-invocation MultiModN forward.

    xt_ref : (B, sum(F_e) + C)  -- [x_0 | ... | x_{E-1} | target]
    p1_ref : (R1, H)            -- [W1x_e rows ; W1s_e rows ; b1_e rows]
    p2_ref : (R2, c_pad + S)    -- [W2d_e rows ; b2d_e rows] (decoder fused)
    s0_ref : (1, S)             -- initial state parameter
    outputs: loss (1,1), pred (B, c_pad), mean_state (1, S)
    """
    B = xt_ref.shape[0]
    H, S, C, c_pad = meta['H'], meta['S'], meta['C'], meta['c_pad']
    n_enc = meta['n_enc']

    # One load of the activation buffer; everything else is value slicing.
    xt = xt_ref[...]
    tgt = xt[:, meta['tgt_off']:meta['tgt_off'] + C]            # (B, C)
    if c_pad > C:
        tgt_pad = jnp.concatenate(
            [tgt, jnp.zeros((B, c_pad - C), jnp.float32)], axis=-1)
    else:
        tgt_pad = tgt
    tgt_mass = jnp.sum(tgt, axis=-1, keepdims=True)              # (B, 1)

    # x-side first-layer contributions: independent of the state chain, so
    # they fill the MXU pipeline up front instead of serializing per step.
    u = []
    for e in range(n_enc):
        f0, f = meta['x_off'][e], meta['F'][e]
        x_e = xt[:, f0:f0 + f]                                    # (B, F_e)
        w1x = p1_ref[meta['w1x_off'][e]:meta['w1x_off'][e] + f, :]   # (F_e, H)
        b1 = p1_ref[meta['b1_off'][e]:meta['b1_off'][e] + 1, :]      # (1, H)
        u.append(jnp.dot(x_e, w1x, preferred_element_type=jnp.float32) + b1)

    # state = repeat(state_param, 'd -> b d', b=B)
    state = jnp.broadcast_to(s0_ref[...], (B, S))

    running_loss = jnp.zeros((1, 1), jnp.float32)
    logits = None
    for e in range(n_enc):                   # static unroll: E is tiny
        w1s = p1_ref[meta['w1s_off'][e]:meta['w1s_off'][e] + S, :]   # (S, H)
        w2d = p2_ref[meta['w2d_off'][e]:meta['w2d_off'][e] + H, :]   # (H, c_pad+S)
        b2d = p2_ref[meta['b2d_off'][e]:meta['b2d_off'][e] + 1, :]   # (1, c_pad+S)

        old_state = state
        h = jnp.maximum(
            jnp.dot(old_state, w1s, preferred_element_type=jnp.float32) + u[e],
            0.0)
        # Fused second-layer + (last) decoder matmul.
        out = jnp.dot(h, w2d, preferred_element_type=jnp.float32) + b2d
        logits = out[:, :c_pad]              # pad classes carry -1e30 bias
        state = out[:, c_pad:c_pad + S]      # 128-lane aligned slice

        # Soft-target CE:  -sum(t * logp) = sum(t) * lse - sum(t * logits).
        # (Exact for any target; does not assume rows sum to 1.)
        m = jnp.max(logits, axis=-1, keepdims=True)
        lse = m + jnp.log(jnp.sum(jnp.exp(logits - m), axis=-1, keepdims=True))
        row_dot = jnp.sum(tgt_pad * logits, axis=-1, keepdims=True)
        err_loss = jnp.mean(tgt_mass * lse - row_dot)
        sc_loss = jnp.mean((state - old_state) ** 2)
        running_loss = running_loss + (err_loss * meta['err_penalty']
                                       + sc_loss * meta['state_change_penalty'])

    # Single final stores; accumulation above lived entirely in registers.
    loss_ref[...] = running_loss / n_enc
    pred_ref[...] = logits                                  # lane-dense store
    # mirrors the module side-effect: state = Parameter(state.mean(dim=0))
    state_out_ref[...] = jnp.mean(state, axis=0, keepdims=True)


def _pack_rows(mats):
    """Stack 2D arrays (same width) row-wise, 8-aligned offsets, zero fill."""
    rows, offs, r = [], [], 0
    for mat in mats:
        n, w = mat.shape
        n_pad = _round_up(n, _SUB)
        buf = jnp.zeros((n_pad, w), jnp.float32).at[:n, :].set(
            mat.astype(jnp.float32))
        rows.append(buf)
        offs.append(r)
        r += n_pad
    return jnp.concatenate(rows, axis=0), offs


def pack_params(enc_params, dec_params, state_init):
    """One-time parameter packing (hoisted out of the per-call hot path).

    enc_params: list of (w1x (F_e,H), w1s (S,H), b1 (1,H), w2 (H,S), b2 (1,S))
    dec_params: list of (wd (S,C), bd (1,C)); only the last decoder matters
                (it overwrites pred/loss in the reference forward).
    state_init: (1, S) initial state parameter.
    """
    n_enc = len(enc_params)
    wd, bd = dec_params[-1]
    S, C = wd.shape
    H = enc_params[0][0].shape[1]
    c_pad = max(_LANE, _round_up(C, _LANE))

    # Lane-padded decoder: zero weight columns / -1e30 bias for pad classes.
    wd_p = jnp.zeros((S, c_pad), jnp.float32).at[:, :C].set(wd.astype(jnp.float32))
    bd_p = jnp.full((1, c_pad), _NEG_INF, jnp.float32).at[:, :C].set(
        bd.astype(jnp.float32))

    # p1: all width-H parameters in one buffer.
    f_list = []
    mats1 = []
    for (w1x, w1s, b1, _w2, _b2) in enc_params:
        assert w1x.shape[1] == H and w1s.shape[1] == H, 'uniform H required'
        f_list.append(w1x.shape[0])
        mats1.append(w1x)
    mats1 += [w1s for (_w1x, w1s, _b1, _w2, _b2) in enc_params]
    mats1 += [b1 for (_w1x, _w1s, b1, _w2, _b2) in enc_params]
    p1, offs1 = _pack_rows(mats1)
    w1x_off = offs1[:n_enc]
    w1s_off = offs1[n_enc:2 * n_enc]
    b1_off = offs1[2 * n_enc:]

    # p2: fused second-layer + decoder weights (logits block first so both
    # lane slices start on 128-lane boundaries).
    w2d_list, b2d_list = [], []
    for (_w1x, _w1s, _b1, w2, b2) in enc_params:
        w2 = w2.astype(jnp.float32)
        b2 = b2.astype(jnp.float32)
        w2d_list.append(jnp.concatenate([w2 @ wd_p, w2], axis=1))          # (H, c_pad+S)
        b2d_list.append(jnp.concatenate([b2 @ wd_p + bd_p, b2], axis=1))   # (1, c_pad+S)
    p2, offs2 = _pack_rows(w2d_list + b2d_list)
    w2d_off = offs2[:n_enc]
    b2d_off = offs2[n_enc:]

    meta = dict(n_enc=n_enc, H=H, S=S, C=C, c_pad=c_pad, F=tuple(f_list),
                w1x_off=tuple(w1x_off), w1s_off=tuple(w1s_off),
                b1_off=tuple(b1_off), w2d_off=tuple(w2d_off),
                b2d_off=tuple(b2d_off))
    return dict(p1=p1, p2=p2,
                s0=state_init.astype(jnp.float32).reshape(1, S),
                meta=meta)


def multimodn_forward(x_list, target, packed,
                      err_penalty=1.0, state_change_penalty=0.0):
    """Full MultiModN forward in a single grid-less pallas_call (4 input DMAs).

    x_list: list (len E) of (B, F_e) float32 modality inputs
    target: (B, C) float32 soft targets (passed at native width)
    packed: output of pack_params
    returns (running_loss (1,1), pred (B,C), mean_state (1,S))
    """
    meta = packed['meta']
    n_enc = meta['n_enc']
    assert len(x_list) == n_enc, 'Number of inputs must match number of encoders'
    B = x_list[0].shape[0]
    S, C, c_pad = meta['S'], meta['C'], meta['c_pad']

    # Single lane-packed activation buffer: [x_0 | ... | x_{E-1} | target].
    xt = jnp.concatenate([x.astype(jnp.float32) for x in x_list]
                         + [target.astype(jnp.float32)], axis=-1)
    x_off, o = [], 0
    for f in meta['F']:
        x_off.append(o)
        o += f
    tgt_off = o

    kernel = functools.partial(
        _multimodn_kernel,
        meta=dict(meta, x_off=tuple(x_off), tgt_off=tgt_off,
                  err_penalty=float(err_penalty),
                  state_change_penalty=float(state_change_penalty)))

    vmem = pl.BlockSpec(memory_space=pltpu.MemorySpace.VMEM)
    loss, pred_pad, mean_state = pl.pallas_call(
        kernel,
        out_shape=(
            jax.ShapeDtypeStruct((1, 1), jnp.float32),
            jax.ShapeDtypeStruct((B, c_pad), jnp.float32),
            jax.ShapeDtypeStruct((1, S), jnp.float32),
        ),
        in_specs=[vmem, vmem, vmem, vmem],
        out_specs=(vmem, vmem, vmem),
    )(xt, packed['p1'], packed['p2'], packed['s0'])
    return loss, pred_pad[:, :C], mean_state


def reference_forward(x_list, target, enc_params, dec_params, state_init,
                      err_penalty, state_change_penalty):
    """Pure-JAX replica of MultiModNModule.forward for correctness checking."""
    B = x_list[0].shape[0]
    state = jnp.broadcast_to(state_init, (B, state_init.shape[-1]))
    running_loss = 0.0
    pred = None
    loss = None
    for (w1x, w1s, b1, w2, b2), x in zip(enc_params, x_list):
        old = state
        h = jax.nn.relu(x @ w1x + old @ w1s + b1)
        state = h @ w2 + b2
        for wd, bd in dec_params:
            pred = state @ wd + bd
            logp = jax.nn.log_softmax(pred, axis=-1)
            err_loss = jnp.mean(-jnp.sum(target * logp, axis=-1))
            sc_loss = jnp.mean((state - old) ** 2)
            loss = err_loss * err_penalty + sc_loss * state_change_penalty
        running_loss = running_loss + loss
    running_loss = running_loss / len(x_list)
    return running_loss, pred, jnp.mean(state, axis=0, keepdims=True)


if __name__ == "__main__":
    # Small, deterministic configuration.
    B, F, S, H, C = 8, 16, 32, 32, 8      # batch, mod features, state, hidden, classes
    E, D = 3, 2                           # number of encoders (modalities), decoders
    ERR_PEN, SC_PEN = 1.0, 0.5

    key = jax.random.PRNGKey(0)
    keys = iter(jax.random.split(key, 64))

    state_init = jax.random.normal(next(keys), (1, S), jnp.float32)

    enc_params = []
    for _ in range(E):
        w1x = jax.random.normal(next(keys), (F, H), jnp.float32) * 0.1
        w1s = jax.random.normal(next(keys), (S, H), jnp.float32) * 0.1
        b1 = jax.random.normal(next(keys), (1, H), jnp.float32) * 0.1
        w2 = jax.random.normal(next(keys), (H, S), jnp.float32) * 0.1
        b2 = jax.random.normal(next(keys), (1, S), jnp.float32) * 0.1
        enc_params.append((w1x, w1s, b1, w2, b2))

    dec_params = []
    for _ in range(D):
        wd = jax.random.normal(next(keys), (S, C), jnp.float32) * 0.1
        bd = jax.random.normal(next(keys), (1, C), jnp.float32) * 0.1
        dec_params.append((wd, bd))

    x_list = [jax.random.normal(next(keys), (B, F), jnp.float32) for _ in range(E)]
    target = jax.nn.softmax(jax.random.normal(next(keys), (B, C), jnp.float32),
                            axis=-1)

    ref_loss, ref_pred, ref_state = reference_forward(
        x_list, target, enc_params, dec_params, state_init, ERR_PEN, SC_PEN)

    packed = pack_params(enc_params, dec_params, state_init)
    fwd = jax.jit(functools.partial(
        multimodn_forward, packed=packed,
        err_penalty=ERR_PEN, state_change_penalty=SC_PEN))
    loss, pred, mean_state = fwd(x_list, target)
    jax.block_until_ready((loss, pred, mean_state))

    # Tolerance allows the (harmless) reassociation from the fused decoder.
    assert jnp.allclose(loss[0, 0], ref_loss, rtol=1e-4, atol=1e-4), (loss, ref_loss)
    assert jnp.allclose(pred, ref_pred, rtol=1e-4, atol=1e-4)
    assert jnp.allclose(mean_state, ref_state, rtol=1e-4, atol=1e-4)

    print("KERNEL_OK")
</pallas_src>

<mosaic_0001>
module attributes {stable_mosaic.version = 11 : i64} {
  func.func @_multimodn_kernel(%arg0: memref<8x56xf32, #tpu.memory_space<vmem>>, %arg1: memref<168x32xf32, #tpu.memory_space<vmem>>, %arg2: memref<120x160xf32, #tpu.memory_space<vmem>>, %arg3: memref<1x32xf32, #tpu.memory_space<vmem>>, %arg4: memref<1x1xf32, #tpu.memory_space<vmem>>, %arg5: memref<8x128xf32, #tpu.memory_space<vmem>>, %arg6: memref<1x32xf32, #tpu.memory_space<vmem>>) attributes {dimension_semantics = [], scalar_prefetch = 0 : i64, scratch_operands = 0 : i64, tpu.core_type = #tpu.core_type<tc>} {
    %c0 = arith.constant 0 : index
    %c0_0 = arith.constant 0 : index
    %0 = vector.load %arg0[%c0, %c0_0] : memref<8x56xf32, #tpu.memory_space<vmem>>, vector<8x56xf32>
    %1 = vector.extract_strided_slice %0 {offsets = [0, 48], sizes = [8, 8], strides = [1, 1]} : vector<8x56xf32> to vector<8x8xf32>
    %cst = arith.constant 0.000000e+00 : f32
    %2 = vector.broadcast %cst : f32 to vector<8x120xf32>
    %3 = tpu.concatenate %1, %2 in 1 : vector<8x8xf32>, vector<8x120xf32> -> vector<8x128xf32>
    %cst_1 = arith.constant dense<0.000000e+00> : vector<8xf32>
    %4 = vector.multi_reduction <add>, %1, %cst_1 [1] : vector<8x8xf32> to vector<8xf32>
    %5 = vector.shape_cast %4 : vector<8xf32> to vector<8x1xf32>
    %6 = vector.extract_strided_slice %0 {offsets = [0, 0], sizes = [8, 16], strides = [1, 1]} : vector<8x56xf32> to vector<8x16xf32>
    %c0_2 = arith.constant 0 : index
    %c0_3 = arith.constant 0 : index
    %7 = vector.load %arg1[%c0_2, %c0_3] : memref<168x32xf32, #tpu.memory_space<vmem>>, vector<16x32xf32>
    %c144 = arith.constant 144 : index
    %c0_4 = arith.constant 0 : index
    %8 = vector.load %arg1[%c144, %c0_4] : memref<168x32xf32, #tpu.memory_space<vmem>>, vector<1x32xf32>
    %cst_5 = arith.constant dense<0.000000e+00> : vector<8x32xf32>
    %9 = tpu.matmul %6, %7, %cst_5 {dimension_numbers = #tpu.dot_dimension_numbers<[1], [0], [0], [1], [0, 0, 1, 1], [], []>} : vector<8x16xf32>, vector<16x32xf32>, vector<8x32xf32> -> vector<8x32xf32>
    %10 = vector.broadcast %8 : vector<1x32xf32> to vector<8x32xf32>
    %11 = arith.addf %9, %10 : vector<8x32xf32>
    %12 = vector.extract_strided_slice %0 {offsets = [0, 16], sizes = [8, 16], strides = [1, 1]} : vector<8x56xf32> to vector<8x16xf32>
    %c16 = arith.constant 16 : index
    %c0_6 = arith.constant 0 : index
    %13 = vector.load %arg1[%c16, %c0_6] : memref<168x32xf32, #tpu.memory_space<vmem>>, vector<16x32xf32>
    %c152 = arith.constant 152 : index
    %c0_7 = arith.constant 0 : index
    %14 = vector.load %arg1[%c152, %c0_7] : memref<168x32xf32, #tpu.memory_space<vmem>>, vector<1x32xf32>
    %cst_8 = arith.constant dense<0.000000e+00> : vector<8x32xf32>
    %15 = tpu.matmul %12, %13, %cst_8 {dimension_numbers = #tpu.dot_dimension_numbers<[1], [0], [0], [1], [0, 0, 1, 1], [], []>} : vector<8x16xf32>, vector<16x32xf32>, vector<8x32xf32> -> vector<8x32xf32>
    %16 = vector.broadcast %14 : vector<1x32xf32> to vector<8x32xf32>
    %17 = arith.addf %15, %16 : vector<8x32xf32>
    %18 = vector.extract_strided_slice %0 {offsets = [0, 32], sizes = [8, 16], strides = [1, 1]} : vector<8x56xf32> to vector<8x16xf32>
    %c32 = arith.constant 32 : index
    %c0_9 = arith.constant 0 : index
    %19 = vector.load %arg1[%c32, %c0_9] : memref<168x32xf32, #tpu.memory_space<vmem>>, vector<16x32xf32>
    %c160 = arith.constant 160 : index
    %c0_10 = arith.constant 0 : index
    %20 = vector.load %arg1[%c160, %c0_10] : memref<168x32xf32, #tpu.memory_space<vmem>>, vector<1x32xf32>
    %cst_11 = arith.constant dense<0.000000e+00> : vector<8x32xf32>
    %21 = tpu.matmul %18, %19, %cst_11 {dimension_numbers = #tpu.dot_dimension_numbers<[1], [0], [0], [1], [0, 0, 1, 1], [], []>} : vector<8x16xf32>, vector<16x32xf32>, vector<8x32xf32> -> vector<8x32xf32>
    %22 = vector.broadcast %20 : vector<1x32xf32> to vector<8x32xf32>
    %23 = arith.addf %21, %22 : vector<8x32xf32>
    %c0_12 = arith.constant 0 : index
    %c0_13 = arith.constant 0 : index
    %24 = vector.load %arg3[%c0_12, %c0_13] : memref<1x32xf32, #tpu.memory_space<vmem>>, vector<1x32xf32>
    %25 = vector.shape_cast %24 : vector<1x32xf32> to vector<1x32xf32>
    %26 = vector.broadcast %25 : vector<1x32xf32> to vector<8x32xf32>
    %cst_14 = arith.constant 0.000000e+00 : f32
    %27 = vector.broadcast %cst_14 : f32 to vector<1x1xf32>
    %c48 = arith.constant 48 : index
    %c0_15 = arith.constant 0 : index
    %28 = vector.load %arg1[%c48, %c0_15] : memref<168x32xf32, #tpu.memory_space<vmem>>, vector<32x32xf32>
    %c0_16 = arith.constant 0 : index
    %c0_17 = arith.constant 0 : index
    %29 = vector.load %arg2[%c0_16, %c0_17] : memref<120x160xf32, #tpu.memory_space<vmem>>, vector<32x160xf32>
    %c96 = arith.constant 96 : index
    %c0_18 = arith.constant 0 : index
    %30 = vector.load %arg2[%c96, %c0_18] : memref<120x160xf32, #tpu.memory_space<vmem>>, vector<1x160xf32>
    %cst_19 = arith.constant dense<0.000000e+00> : vector<8x32xf32>
    %31 = tpu.matmul %26, %28, %cst_19 {dimension_numbers = #tpu.dot_dimension_numbers<[1], [0], [0], [1], [0, 0, 1, 1], [], []>} : vector<8x32xf32>, vector<32x32xf32>, vector<8x32xf32> -> vector<8x32xf32>
    %32 = arith.addf %31, %11 : vector<8x32xf32>
    %cst_20 = arith.constant 0.000000e+00 : f32
    %33 = vector.broadcast %cst_20 : f32 to vector<8x32xf32>
    %34 = arith.maximumf %32, %33 : vector<8x32xf32>
    %cst_21 = arith.constant dense<0.000000e+00> : vector<8x160xf32>
    %35 = tpu.matmul %34, %29, %cst_21 {dimension_numbers = #tpu.dot_dimension_numbers<[1], [0], [0], [1], [0, 0, 1, 1], [], []>} : vector<8x32xf32>, vector<32x160xf32>, vector<8x160xf32> -> vector<8x160xf32>
    %36 = vector.broadcast %30 : vector<1x160xf32> to vector<8x160xf32>
    %37 = arith.addf %35, %36 : vector<8x160xf32>
    %38 = vector.extract_strided_slice %37 {offsets = [0, 0], sizes = [8, 128], strides = [1, 1]} : vector<8x160xf32> to vector<8x128xf32>
    %39 = vector.extract_strided_slice %37 {offsets = [0, 128], sizes = [8, 32], strides = [1, 1]} : vector<8x160xf32> to vector<8x32xf32>
    %cst_22 = arith.constant dense<0xFF800000> : vector<8xf32>
    %40 = vector.multi_reduction <maximumf>, %38, %cst_22 [1] : vector<8x128xf32> to vector<8xf32>
    %41 = vector.shape_cast %40 : vector<8xf32> to vector<8x1xf32>
    %42 = vector.broadcast %41 : vector<8x1xf32> to vector<8x128xf32>
    %43 = arith.subf %38, %42 : vector<8x128xf32>
    %44 = math.exp %43 : vector<8x128xf32>
    %cst_23 = arith.constant dense<0.000000e+00> : vector<8xf32>
    %45 = vector.multi_reduction <add>, %44, %cst_23 [1] : vector<8x128xf32> to vector<8xf32>
    %46 = vector.shape_cast %45 : vector<8xf32> to vector<8x1xf32>
    %47 = math.log %46 : vector<8x1xf32>
    %48 = arith.addf %41, %47 : vector<8x1xf32>
    %49 = arith.mulf %3, %38 : vector<8x128xf32>
    %cst_24 = arith.constant dense<0.000000e+00> : vector<8xf32>
    %50 = vector.multi_reduction <add>, %49, %cst_24 [1] : vector<8x128xf32> to vector<8xf32>
    %51 = vector.shape_cast %50 : vector<8xf32> to vector<8x1xf32>
    %52 = arith.mulf %5, %48 : vector<8x1xf32>
    %53 = arith.subf %52, %51 : vector<8x1xf32>
    %54 = vector.shape_cast %53 : vector<8x1xf32> to vector<1x8x1xf32>
    %cst_25 = arith.constant dense<0.000000e+00> : vector<1xf32>
    %55 = vector.multi_reduction <add>, %54, %cst_25 [1, 2] : vector<1x8x1xf32> to vector<1xf32>
    %56 = vector.shape_cast %55 : vector<1xf32> to vector<1x1x1xf32>
    %57 = vector.extract %56[0, 0, 0] : f32 from vector<1x1x1xf32>
    %cst_26 = arith.constant 8.000000e+00 : f32
    %58 = arith.divf %57, %cst_26 : f32
    %59 = arith.subf %39, %26 : vector<8x32xf32>
    %60 = arith.mulf %59, %59 : vector<8x32xf32>
    %61 = vector.shape_cast %60 : vector<8x32xf32> to vector<1x8x32xf32>
    %cst_27 = arith.constant dense<0.000000e+00> : vector<1xf32>
    %62 = vector.multi_reduction <add>, %61, %cst_27 [1, 2] : vector<1x8x32xf32> to vector<1xf32>
    %63 = vector.shape_cast %62 : vector<1xf32> to vector<1x1x1xf32>
    %64 = vector.extract %63[0, 0, 0] : f32 from vector<1x1x1xf32>
    %cst_28 = arith.constant 2.560000e+02 : f32
    %65 = arith.divf %64, %cst_28 : f32
    %cst_29 = arith.constant 1.000000e+00 : f32
    %66 = arith.mulf %58, %cst_29 : f32
    %cst_30 = arith.constant 5.000000e-01 : f32
    %67 = arith.mulf %65, %cst_30 : f32
    %68 = arith.addf %66, %67 : f32
    %69 = vector.broadcast %68 : f32 to vector<1x1xf32>
    %70 = arith.addf %27, %69 : vector<1x1xf32>
    %c80 = arith.constant 80 : index
    %c0_31 = arith.constant 0 : index
    %71 = vector.load %arg1[%c80, %c0_31] : memref<168x32xf32, #tpu.memory_space<vmem>>, vector<32x32xf32>
    %c32_32 = arith.constant 32 : index
    %c0_33 = arith.constant 0 : index
    %72 = vector.load %arg2[%c32_32, %c0_33] : memref<120x160xf32, #tpu.memory_space<vmem>>, vector<32x160xf32>
    %c104 = arith.constant 104 : index
    %c0_34 = arith.constant 0 : index
    %73 = vector.load %arg2[%c104, %c0_34] : memref<120x160xf32, #tpu.memory_space<vmem>>, vector<1x160xf32>
    %cst_35 = arith.constant dense<0.000000e+00> : vector<8x32xf32>
    %74 = tpu.matmul %39, %71, %cst_35 {dimension_numbers = #tpu.dot_dimension_numbers<[1], [0], [0], [1], [0, 0, 1, 1], [], []>} : vector<8x32xf32>, vector<32x32xf32>, vector<8x32xf32> -> vector<8x32xf32>
    %75 = arith.addf %74, %17 : vector<8x32xf32>
    %cst_36 = arith.constant 0.000000e+00 : f32
    %76 = vector.broadcast %cst_36 : f32 to vector<8x32xf32>
    %77 = arith.maximumf %75, %76 : vector<8x32xf32>
    %cst_37 = arith.constant dense<0.000000e+00> : vector<8x160xf32>
    %78 = tpu.matmul %77, %72, %cst_37 {dimension_numbers = #tpu.dot_dimension_numbers<[1], [0], [0], [1], [0, 0, 1, 1], [], []>} : vector<8x32xf32>, vector<32x160xf32>, vector<8x160xf32> -> vector<8x160xf32>
    %79 = vector.broadcast %73 : vector<1x160xf32> to vector<8x160xf32>
    %80 = arith.addf %78, %79 : vector<8x160xf32>
    %81 = vector.extract_strided_slice %80 {offsets = [0, 0], sizes = [8, 128], strides = [1, 1]} : vector<8x160xf32> to vector<8x128xf32>
    %82 = vector.extract_strided_slice %80 {offsets = [0, 128], sizes = [8, 32], strides = [1, 1]} : vector<8x160xf32> to vector<8x32xf32>
    %cst_38 = arith.constant dense<0xFF800000> : vector<8xf32>
    %83 = vector.multi_reduction <maximumf>, %81, %cst_38 [1] : vector<8x128xf32> to vector<8xf32>
    %84 = vector.shape_cast %83 : vector<8xf32> to vector<8x1xf32>
    %85 = vector.broadcast %84 : vector<8x1xf32> to vector<8x128xf32>
    %86 = arith.subf %81, %85 : vector<8x128xf32>
    %87 = math.exp %86 : vector<8x128xf32>
    %cst_39 = arith.constant dense<0.000000e+00> : vector<8xf32>
    %88 = vector.multi_reduction <add>, %87, %cst_39 [1] : vector<8x128xf32> to vector<8xf32>
    %89 = vector.shape_cast %88 : vector<8xf32> to vector<8x1xf32>
    %90 = math.log %89 : vector<8x1xf32>
    %91 = arith.addf %84, %90 : vector<8x1xf32>
    %92 = arith.mulf %3, %81 : vector<8x128xf32>
    %cst_40 = arith.constant dense<0.000000e+00> : vector<8xf32>
    %93 = vector.multi_reduction <add>, %92, %cst_40 [1] : vector<8x128xf32> to vector<8xf32>
    %94 = vector.shape_cast %93 : vector<8xf32> to vector<8x1xf32>
    %95 = arith.mulf %5, %91 : vector<8x1xf32>
    %96 = arith.subf %95, %94 : vector<8x1xf32>
    %97 = vector.shape_cast %96 : vector<8x1xf32> to vector<1x8x1xf32>
    %cst_41 = arith.constant dense<0.000000e+00> : vector<1xf32>
    %98 = vector.multi_reduction <add>, %97, %cst_41 [1, 2] : vector<1x8x1xf32> to vector<1xf32>
    %99 = vector.shape_cast %98 : vector<1xf32> to vector<1x1x1xf32>
    %100 = vector.extract %99[0, 0, 0] : f32 from vector<1x1x1xf32>
    %cst_42 = arith.constant 8.000000e+00 : f32
    %101 = arith.divf %100, %cst_42 : f32
    %102 = arith.subf %82, %39 : vector<8x32xf32>
    %103 = arith.mulf %102, %102 : vector<8x32xf32>
    %104 = vector.shape_cast %103 : vector<8x32xf32> to vector<1x8x32xf32>
    %cst_43 = arith.constant dense<0.000000e+00> : vector<1xf32>
    %105 = vector.multi_reduction <add>, %104, %cst_43 [1, 2] : vector<1x8x32xf32> to vector<1xf32>
    %106 = vector.shape_cast %105 : vector<1xf32> to vector<1x1x1xf32>
    %107 = vector.extract %106[0, 0, 0] : f32 from vector<1x1x1xf32>
    %cst_44 = arith.constant 2.560000e+02 : f32
    %108 = arith.divf %107, %cst_44 : f32
    %cst_45 = arith.constant 1.000000e+00 : f32
    %109 = arith.mulf %101, %cst_45 : f32
    %cst_46 = arith.constant 5.000000e-01 : f32
    %110 = arith.mulf %108, %cst_46 : f32
    %111 = arith.addf %109, %110 : f32
    %112 = vector.broadcast %111 : f32 to vector<1x1xf32>
    %113 = arith.addf %70, %112 : vector<1x1xf32>
    %c112 = arith.constant 112 : index
    %c0_47 = arith.constant 0 : index
    %114 = vector.load %arg1[%c112, %c0_47] : memref<168x32xf32, #tpu.memory_space<vmem>>, vector<32x32xf32>
    %c64 = arith.constant 64 : index
    %c0_48 = arith.constant 0 : index
    %115 = vector.load %arg2[%c64, %c0_48] : memref<120x160xf32, #tpu.memory_space<vmem>>, vector<32x160xf32>
    %c112_49 = arith.constant 112 : index
    %c0_50 = arith.constant 0 : index
    %116 = vector.load %arg2[%c112_49, %c0_50] : memref<120x160xf32, #tpu.memory_space<vmem>>, vector<1x160xf32>
    %cst_51 = arith.constant dense<0.000000e+00> : vector<8x32xf32>
    %117 = tpu.matmul %82, %114, %cst_51 {dimension_numbers = #tpu.dot_dimension_numbers<[1], [0], [0], [1], [0, 0, 1, 1], [], []>} : vector<8x32xf32>, vector<32x32xf32>, vector<8x32xf32> -> vector<8x32xf32>
    %118 = arith.addf %117, %23 : vector<8x32xf32>
    %cst_52 = arith.constant 0.000000e+00 : f32
    %119 = vector.broadcast %cst_52 : f32 to vector<8x32xf32>
    %120 = arith.maximumf %118, %119 : vector<8x32xf32>
    %cst_53 = arith.constant dense<0.000000e+00> : vector<8x160xf32>
    %121 = tpu.matmul %120, %115, %cst_53 {dimension_numbers = #tpu.dot_dimension_numbers<[1], [0], [0], [1], [0, 0, 1, 1], [], []>} : vector<8x32xf32>, vector<32x160xf32>, vector<8x160xf32> -> vector<8x160xf32>
    %122 = vector.broadcast %116 : vector<1x160xf32> to vector<8x160xf32>
    %123 = arith.addf %121, %122 : vector<8x160xf32>
    %124 = vector.extract_strided_slice %123 {offsets = [0, 0], sizes = [8, 128], strides = [1, 1]} : vector<8x160xf32> to vector<8x128xf32>
    %125 = vector.extract_strided_slice %123 {offsets = [0, 128], sizes = [8, 32], strides = [1, 1]} : vector<8x160xf32> to vector<8x32xf32>
    %cst_54 = arith.constant dense<0xFF800000> : vector<8xf32>
    %126 = vector.multi_reduction <maximumf>, %124, %cst_54 [1] : vector<8x128xf32> to vector<8xf32>
    %127 = vector.shape_cast %126 : vector<8xf32> to vector<8x1xf32>
    %128 = vector.broadcast %127 : vector<8x1xf32> to vector<8x128xf32>
    %129 = arith.subf %124, %128 : vector<8x128xf32>
    %130 = math.exp %129 : vector<8x128xf32>
    %cst_55 = arith.constant dense<0.000000e+00> : vector<8xf32>
    %131 = vector.multi_reduction <add>, %130, %cst_55 [1] : vector<8x128xf32> to vector<8xf32>
    %132 = vector.shape_cast %131 : vector<8xf32> to vector<8x1xf32>
    %133 = math.log %132 : vector<8x1xf32>
    %134 = arith.addf %127, %133 : vector<8x1xf32>
    %135 = arith.mulf %3, %124 : vector<8x128xf32>
    %cst_56 = arith.constant dense<0.000000e+00> : vector<8xf32>
    %136 = vector.multi_reduction <add>, %135, %cst_56 [1] : vector<8x128xf32> to vector<8xf32>
    %137 = vector.shape_cast %136 : vector<8xf32> to vector<8x1xf32>
    %138 = arith.mulf %5, %134 : vector<8x1xf32>
    %139 = arith.subf %138, %137 : vector<8x1xf32>
    %140 = vector.shape_cast %139 : vector<8x1xf32> to vector<1x8x1xf32>
    %cst_57 = arith.constant dense<0.000000e+00> : vector<1xf32>
    %141 = vector.multi_reduction <add>, %140, %cst_57 [1, 2] : vector<1x8x1xf32> to vector<1xf32>
    %142 = vector.shape_cast %141 : vector<1xf32> to vector<1x1x1xf32>
    %143 = vector.extract %142[0, 0, 0] : f32 from vector<1x1x1xf32>
    %cst_58 = arith.constant 8.000000e+00 : f32
    %144 = arith.divf %143, %cst_58 : f32
    %145 = arith.subf %125, %82 : vector<8x32xf32>
    %146 = arith.mulf %145, %145 : vector<8x32xf32>
    %147 = vector.shape_cast %146 : vector<8x32xf32> to vector<1x8x32xf32>
    %cst_59 = arith.constant dense<0.000000e+00> : vector<1xf32>
    %148 = vector.multi_reduction <add>, %147, %cst_59 [1, 2] : vector<1x8x32xf32> to vector<1xf32>
    %149 = vector.shape_cast %148 : vector<1xf32> to vector<1x1x1xf32>
    %150 = vector.extract %149[0, 0, 0] : f32 from vector<1x1x1xf32>
    %cst_60 = arith.constant 2.560000e+02 : f32
    %151 = arith.divf %150, %cst_60 : f32
    %cst_61 = arith.constant 1.000000e+00 : f32
    %152 = arith.mulf %144, %cst_61 : f32
    %cst_62 = arith.constant 5.000000e-01 : f32
    %153 = arith.mulf %151, %cst_62 : f32
    %154 = arith.addf %152, %153 : f32
    %155 = vector.broadcast %154 : f32 to vector<1x1xf32>
    %156 = arith.addf %113, %155 : vector<1x1xf32>
    %cst_63 = arith.constant 3.000000e+00 : f32
    %157 = vector.broadcast %cst_63 : f32 to vector<1x1xf32>
    %158 = arith.divf %156, %157 : vector<1x1xf32>
    %c0_64 = arith.constant 0 : index
    %c0_65 = arith.constant 0 : index
    %159 = vector.load %arg4[%c0_64, %c0_65] : memref<1x1xf32, #tpu.memory_space<vmem>>, vector<1x1xf32>
    tpu.vector_store %arg4[%c0_64, %c0_65], %158 {strides = array<i32>} : memref<1x1xf32, #tpu.memory_space<vmem>>, vector<1x1xf32>,
    %c0_66 = arith.constant 0 : index
    %c0_67 = arith.constant 0 : index
    %160 = vector.load %arg5[%c0_66, %c0_67] : memref<8x128xf32, #tpu.memory_space<vmem>>, vector<8x128xf32>
    tpu.vector_store %arg5[%c0_66, %c0_67], %124 {strides = array<i32>} : memref<8x128xf32, #tpu.memory_space<vmem>>, vector<8x128xf32>,
    %cst_68 = arith.constant dense<0.000000e+00> : vector<32xf32>
    %161 = vector.multi_reduction <add>, %125, %cst_68 [0] : vector<8x32xf32> to vector<32xf32>
    %162 = vector.shape_cast %161 : vector<32xf32> to vector<1x32xf32>
    %cst_69 = arith.constant 8.000000e+00 : f32
    %163 = vector.broadcast %cst_69 : f32 to vector<1x32xf32>
    %164 = arith.divf %162, %163 : vector<1x32xf32>
    %c0_70 = arith.constant 0 : index
    %c0_71 = arith.constant 0 : index
    %165 = vector.load %arg6[%c0_70, %c0_71] : memref<1x32xf32, #tpu.memory_space<vmem>>, vector<1x32xf32>
    tpu.vector_store %arg6[%c0_70, %c0_71], %164 {strides = array<i32>} : memref<1x32xf32, #tpu.memory_space<vmem>>, vector<1x32xf32>,
    return
  }
}

</mosaic_0001>

<bundles_post_ra>
// kernel: multimodn_forward.1
= control target key start
LH: loop header
LB: loop body
LE: loop exit
PB: predicated region body
PF: predicated region fallthrough
CT: control target
= control target key end

     0   :  { %12 = vsyncpa [#allocation3], 0  ;;  %s983_s0 = inlined_call_operand.vmem [shape: f32[8,56], index: 0, kind: input, shape index: {}]   ;;  %s984_s1 = inlined_call_operand.hbm [shape: f32[168,32], index: 1, kind: input, shape index: {}]   ;;  %s985_s2 = inlined_call_operand.hbm [shape: f32[120,160], index: 2, kind: input, shape index: {}]   ;;  %s986_s3 = inlined_call_operand.vmem [shape: f32[1,32], index: 3, kind: input, shape index: {}]   ;;  %s987_s4 = inlined_call_operand.hbm [shape: f32[1,1], index: 4, kind: output, shape index: {0}]   ;;  %s988_s5 = inlined_call_operand.hbm [shape: f32[8,128], index: 5, kind: output, shape index: {1}]   ;;  %s989_s6 = inlined_call_operand.hbm [shape: f32[1,32], index: 6, kind: output, shape index: {2}]  }
   0x1   :  { %13 = vsyncpa [#allocation6], 0 }
   0x2   :  { %14 = vsyncpa [#allocation4], 0 }
   0x3   :  { %15 = vsyncpa [#allocation9], 0  ;;  %s22_s23 = sshll.u32 %s984_s1, 4  ;;  %s856_s24 = smov [#allocation2]   ;;  %s23_s23 = int_to_ptr.hbm [resolvable:$true] %s22_s23 }
   0x4   :  { %s24_s25 = sshll.u32 %s856_s24, 4  ;;  %s35_s28 = sshll.u32 %s985_s2, 4  ;;  %s25_s25 = int_to_ptr.vmem [resolvable:$true] %s24_s25  ;;  %s36_s28 = int_to_ptr.hbm [resolvable:$true] %s35_s28 }
   0x5   :  { %s857_s29 = smov 128   ;;  %s858_s30 = smov 8  }
   0x6   :  { %30 = dma.hbm_to_vmem [thread:$0]  %s23_s23, 2688, %s25_s25, [#allocation3], %s857_s29, %s857_s29, %s858_s30  }
   0x7   :  { %s859_s7 = smov [#allocation5]   ;;  %s860_s9 = smov 256  }
   0x8   :  { %s37_s8 = sshll.u32 %s859_s7, 4  ;;  %s861_s10 = smov 16   ;;  %s38_s8 = int_to_ptr.vmem [resolvable:$true] %s37_s8 }
   0x9   :  { %43 = dma.hbm_to_vmem [thread:$0]  %s36_s28, 3840, %s38_s8, [#allocation6], %s860_s9, %s860_s9, %s861_s10  }
   0xa   :  { %848 = dma.done.wait [#allocation3], 2688  }
   0xb   :  { %849 = vsyncadd [#allocation3], 4294964608 }
   0xc   :  { %850 = dma.done.wait [#allocation6], 3840  }
   0xd   :  { %851 = vsyncadd [#allocation6], 4294963456  ;;  %v153_v0 = vld [vmem:[#allocation2 + $0x48] sm:$0xff]  ;;  %v152_v1 = vld [vmem:[#allocation2 + $0x40] sm:$0xff]  ;;  %vm67_vm0 = vcmask 130048   ;;  %s862_s13 = smov 112  }
   0xe   :  { %179 = vmatpush.msra.mxu3 %v153_v0  ;;  %v151_v2 = vld [vmem:[#allocation2 + $0x38] sm:$0xff]  ;;  %v150_v3 = vld [vmem:[#allocation2 + $0x30] sm:$0xff]  ;;  %v64_v4 = vld [vmem:[#allocation2 + $0x8] sm:$0xff]  ;;  %vm164_vm1 = vcmask 261120   ;;  %vm612_vm3 = vcmask 253952   ;;  %vm59_vm4 = vcmask 64512  }
   0xf   :  { %v63_v5 = vld [vmem:[#allocation2] sm:$0xff]  ;;  %84 = vmatpush.msra.mxu0 %v64_v4  ;;  %v91_v7 = vld [vmem:[#allocation2 + $0x18] sm:$0xff]  ;;  %v90_v8 = vld [vmem:[#allocation2 + $0x10] sm:$0xff]  ;;  %vm251_vm5 = vcmask 7168   ;;  %s632_s16 = sshll.u32 %s988_s5, 4  ;;  %s866_s17 = smov [#allocation8]   ;;  %s633_s16 = int_to_ptr.hbm [resolvable:$true] %s632_s16 }
  0x10   :  { %v915_v6 = vld [vmem:[%s983_s0] sm:$0xff]  ;;  %180 = vmatpush.msra.mxu3 %v152_v1  ;;  %112 = vmatpush.msra.mxu1 %v91_v7  ;;  %s863_s0 = smov 96   ;;  %v160_v11 = vld [vmem:[#allocation5 + $0x30] sm:$0xff]  ;;  %v159_v12 = vld [vmem:[#allocation5 + $0x28] sm:$0xff]  ;;  %s630_s18 = sshll.u32 %s866_s17, 4  ;;  %vm594_vm8 = vcmask 0   ;;  %s631_s18 = int_to_ptr.vmem [resolvable:$true] %s630_s18 }
  0x11   :  { %v920_v9 = vld [vmem:[%s986_s3] ss:$0 sm:$0xff]  ;;  %94 = vrot.lane.b32.xlu0 %v915_v6, %s862_s13  ;;  %85 = vmatpush.msra.mxu0 %v63_v5  ;;  %v158_v13 = vld [vmem:[#allocation5 + $0x20] sm:$0xff]  ;;  %v156_v15 = vld [vmem:[#allocation5 + $0x10] sm:$0xff]  ;;  %s865_s3 = smov 80   ;;  %s643_s21 = sshll.u32 %s989_s6, 4  ;;  %s644_s21 = int_to_ptr.hbm [resolvable:$true] %s643_s21 }
  0x12   :  { %181 = vmatpush.msra.mxu3 %v151_v2  ;;  %663 = vmatmul.msk.f32.vlgmr.msra.gmra.mxu0 %vm67_vm0, %v915_v6  ;;  %v161_v10 = vld [vmem:[#allocation5 + $0x38] sm:$0xff]  ;;  %v155_v16 = vld [vmem:[#allocation5 + $0x8] sm:$0xff]  ;;  %v154_v17 = vld [vmem:[#allocation5] sm:$0xff]  ;;  %s867_s22 = smov [#allocation10]   ;;  %s870_s14 = smov [#allocation7]  }
  0x13   :  { %113 = vmatpush.msra.mxu1 %v90_v8  ;;  %208 = vmatpush.msrb.mxu0 %v160_v11  ;;  %v157_v14 = vld [vmem:[#allocation5 + $0x18] sm:$0xff]  ;;  %v707_v19 = vld [vmem:[#allocation2 + $0x90] ss:$0 sm:$0xff]  ;;  %v119_v25 = vld [vmem:[#allocation2 + $0x28] sm:$0xff]  ;;  %s641_s23 = sshll.u32 %s867_s22, 4  ;;  %s619_s15 = sshll.u32 %s870_s14, 4  ;;  %s642_s23 = int_to_ptr.vmem [resolvable:$true] %s641_s23  ;;  %s620_s15 = int_to_ptr.vmem [resolvable:$true] %s619_s15 }
  0x14   :  { %182 = vmatpush.msra.mxu3 %v150_v3  ;;  %v118_v26 = vld [vmem:[#allocation2 + $0x20] sm:$0xff]  ;;  %140 = vmatpush.msra.mxu2 %v119_v25  ;;  %v299_v28 = vld [vmem:[#allocation2 + $0x68] sm:$0xff]  ;;  %v297_v30 = vld [vmem:[#allocation2 + $0x58] sm:$0xff] }
  0x15   :  { %666 = vmatmul.msk.f32.vlgmr.msra.gmra.mxu3 %vm164_vm1, %v920_v9  ;;  %228 = vmatpush.msrb.mxu1 %v161_v10  ;;  %v298_v29 = vld [vmem:[#allocation2 + $0x60] sm:$0xff]  ;;  %v296_v31 = vld [vmem:[#allocation2 + $0x50] sm:$0xff]  ;;  %v306_v41 = vld [vmem:[#allocation5 + $0x70] sm:$0xff] }
  0x16   :  { %209 = vmatpush.msrb.mxu0 %v158_v13  ;;  %141 = vmatpush.msra.mxu2 %v118_v26  ;;  %v163_v33 = vld [vmem:[#allocation5 + $0xc0] ss:$8 sm:$0x3]  ;;  %v307_v40 = vld [vmem:[#allocation5 + $0x78] sm:$0xff]  ;;  %v302_v45 = vld [vmem:[#allocation5 + $0x50] sm:$0xff] }
  0x17   :  { %229 = vmatpush.msrb.mxu1 %v159_v12  ;;  %v189_v34 = vperm.slane %v163_v33, 0  ;;  %v190_v35 = vperm.slane %v163_v33, 1  ;;  %v305_v42 = vld [vmem:[#allocation5 + $0x68] sm:$0xff]  ;;  %354 = vmatpush.msrb.mxu3 %v306_v41  ;;  %v304_v43 = vld [vmem:[#allocation5 + $0x60] sm:$0xff]  ;;  %v303_v44 = vld [vmem:[#allocation5 + $0x58] sm:$0xff] }
  0x18   :  { %210 = vmatpush.msrb.mxu0 %v156_v15  ;;  %325 = vmatpush.msrb.mxu2 %v299_v28  ;;  %v301_v46 = vld [vmem:[#allocation5 + $0x48] sm:$0xff]  ;;  %v300_v47 = vld [vmem:[#allocation5 + $0x40] sm:$0xff]  ;;  %v708_v53 = vld [vmem:[#allocation2 + $0x98] ss:$0 sm:$0xff] }
  0x19   :  { %122 = vrot.lane.b32.xlu0 %v915_v6, %s863_s0  ;;  %230 = vmatpush.msrb.mxu1 %v157_v14  ;;  %v444_v61 = vld [vmem:[#allocation2 + $0x88] sm:$0xff]  ;;  %v443_v62 = vld [vmem:[#allocation2 + $0x80] sm:$0xff]  ;;  %v442_v63 = vld [vmem:[#allocation2 + $0x78] sm:$0xff] }
  0x1a   :  { %211 = vmatpush.msrb.mxu0 %v154_v17  ;;  %326 = vmatpush.msrb.mxu2 %v298_v29  ;;  %v441_v0 = vld [vmem:[#allocation2 + $0x70] sm:$0xff]  ;;  %v309_v1 = vld [vmem:[#allocation5 + $0xd0] ss:$8 sm:$0x3]  ;;  %v449_v14 = vld [vmem:[#allocation5 + $0xa0] sm:$0xff]  ;;  %v864_v29 = vmov 8.0  }
  0x1b   :  { %231 = vmatpush.msrb.mxu1 %v155_v16  ;;  %355 = vmatpush.msrb.mxu3 %v304_v43  ;;  %v336_v2 = vperm.slane %v309_v1, 1  ;;  %v335_v5 = vperm.slane %v309_v1, 0  ;;  %v451_v12 = vld [vmem:[#allocation5 + $0xb0] sm:$0xff]  ;;  %v452_v13 = vld [vmem:[#allocation5 + $0xb8] sm:$0xff]  ;;  %v450_v15 = vld [vmem:[#allocation5 + $0xa8] sm:$0xff] }
  0x1c   :  { %327 = vmatpush.msrb.mxu2 %v297_v30  ;;  %374 = vmatpush.msra.mxu0 %v307_v40  ;;  %v447_v16 = vld [vmem:[#allocation5 + $0x90] sm:$0xff]  ;;  %v448_v17 = vld [vmem:[#allocation5 + $0x98] sm:$0xff] }
  0x1d   :  { %356 = vmatpush.msrb.mxu3 %v302_v45 }
  0x1e   :  { %328 = vmatpush.msrb.mxu2 %v296_v31  ;;  %375 = vmatpush.msra.mxu0 %v305_v42  ;;  %v454_v31 = vld [vmem:[#allocation5 + $0xe0] ss:$8 sm:$0x3] }
  0x1f   :  { %357 = vmatpush.msrb.mxu3 %v300_v47  ;;  %v481_v33 = vperm.slane %v454_v31, 1 }
  0x20   :  { %376 = vmatpush.msra.mxu0 %v303_v44 }
  0x21   :  { %519 = vmatpush.msra.mxu3 %v452_v13 }
  0x22   :  { %377 = vmatpush.msra.mxu0 %v301_v46 }
  0x23   :  { %520 = vmatpush.msra.mxu3 %v450_v15 }
  0x25   :  { %521 = vmatpush.msra.mxu3 %v448_v17 }
  0x83   :  { %v95_v18 = vpop.permute.xlu0 %94 }
  0x84   :  { %664 = vmatmul.msk.f32.vlgmr.msra.gmra.mxu1 %vm67_vm0, %v95_v18  ;;  %v445_v18 = vld [vmem:[#allocation5 + $0x80] sm:$0xff] }
  0x85   :  { %470 = vmatpush.msra.mxu1 %v444_v61 }
  0x87   :  { %471 = vmatpush.msra.mxu1 %v443_v62 }
  0x89   :  { %472 = vmatpush.msra.mxu1 %v442_v63 }
  0x8b   :  { %v123_v27 = vpop.permute.xlu0 %122  ;;  %473 = vmatpush.msra.mxu1 %v441_v0 }
  0x8c   :  { %665 = vmatmul.msk.f32.vlgmr.msra.gmra.mxu2 %vm67_vm0, %v123_v27 }
  0x8d   :  { %499 = vmatpush.msra.mxu2 %v451_v12 }
  0x8f   :  { %v87_v20 = vpop.f32.mrf.mxu0  ;;  %500 = vmatpush.msra.mxu2 %v449_v14 }
  0x90   :  { %v88_v21 = vadd.f32 %v707_v19, %v87_v20  ;;  %v446_v19 = vld [vmem:[#allocation5 + $0x88] sm:$0xff]  ;;  %v709_v20 = vld [vmem:[#allocation2 + $0xa0] ss:$0 sm:$0xff] }
  0x91   :  { %501 = vmatpush.msra.mxu2 %v447_v16  ;;  %522 = vmatpush.msra.mxu3 %v446_v19 }
  0x93   :  { %502 = vmatpush.msra.mxu2 %v445_v18 }
  0x98   :  { %v184_v22 = vpop.f32.mrf.mxu3 }
  0x99   :  { %v185_v23 = vadd.f32 %v184_v22, %v88_v21 }
  0x9b   :  { %v187_v24 = vmax.f32 %v185_v23, 0.0 }
  0x9d   :  { %667 = vmatmul.msk.f32.vlgmr.msrb.gmra.mxu0 %vm164_vm1, %v187_v24  ;;  %668 = vmatmul.msk.f32.vlgmr.msrb.gmra.mxu1 %vm164_vm1, %v187_v24 }
 0x101   :  { %v115_v32 = vpop.f32.mrf.mxu1 }
 0x102   :  { %v116_v55 = vadd.f32 %v708_v53, %v115_v32  ;;  %v480_v32 = vperm.slane %v454_v31, 0 }
 0x10f   :  { %v143_v51 = vpop.f32.mrf.mxu2 }
 0x110   :  { %v144_v23 = vadd.f32 %v709_v20, %v143_v51 }
 0x11a   :  { %v213_v36 = vpop.f32.mrf.mxu0  ;;  %v233_v37 = vpop.f32.mrf.mxu1 }
 0x11b   :  { %v932_v38 = vadd.f32 %v213_v36, %v189_v34  ;;  %v234_v39 = vadd.f32 %v233_v37, %v190_v35 }
 0x11d   :  { %669 = vmatmul.msk.f32.vlgmr.msrb.gmra.mxu2 %vm164_vm1, %v234_v39  ;;  %236 = vmax.xlane.f32.xlu1 %v932_v38  ;;  %v271_v54 = vsub.f32 %v234_v39, %v920_v9 }
 0x11f   :  { %v272_v56 = vmul.f32 %v271_v54, %v271_v54 }
 0x121   :  { %v273_v60 = vsel %vm164_vm1, %v272_v56, 0.0 }
 0x190   :  { %v936_v48 = vpop.xlane.xlu1 %236 }
 0x191   :  { %v238_v49 = vsub.f32 %v932_v38, %v936_v48 }
 0x193   :  { %v239_v50 = vmul.f32 1.442695, %v238_v49 }
 0x195   :  { %710 = vpow2.f32 %v239_v50 }
 0x19b   :  { %v711_v52 = vpop.eup %710 }
 0x19c   :  { %241 = vadd.xlane.f32.xlu0 %v711_v52 }
 0x1a0   :  { %v330_v57 = vpop.f32.mrf.mxu2 }
 0x1a1   :  { %v331_v58 = vadd.f32 %v330_v57, %v116_v55 }
 0x1a3   :  { %v333_v59 = vmax.f32 %v331_v58, 0.0 }
 0x1a4   :  { %274 = vadd.xlane.f32.xlu0 %v273_v60 }
 0x1a5   :  { %670 = vmatmul.msk.f32.vlgmr.msrb.gmra.mxu3 %vm164_vm1, %v333_v59  ;;  %671 = vmatmul.msk.f32.vlgmr.msra.gmra.mxu0 %vm164_vm1, %v333_v59 }
 0x20f   :  { %v242_v0 = vpop.xlane.xlu0 %241 }
 0x222   :  { %v379_v3 = vpop.f32.mrf.mxu0 }
 0x223   :  { %v944_v4 = vadd.f32 %v379_v3, %v336_v2 }
 0x225   :  { %672 = vmatmul.msk.f32.vlgmr.msra.gmra.mxu1 %vm164_vm1, %v944_v4  ;;  %v416_v7 = vsub.f32 %v944_v4, %v234_v39 }
 0x227   :  { %v417_v8 = vmul.f32 %v416_v7, %v416_v7 }
 0x228   :  { %v359_v9 = vpop.f32.mrf.mxu3 }
 0x229   :  { %v949_v10 = vadd.f32 %v359_v9, %v335_v5  ;;  %v418_v11 = vsel %vm164_vm1, %v417_v8, 0.0 }
 0x22a   :  { %419 = vadd.xlane.f32.xlu0 %v418_v11 }
 0x22b   :  { %382 = vmax.xlane.f32.xlu1 %v949_v10 }
 0x29e   :  { %v953_v21 = vpop.xlane.xlu1 %382 }
 0x29f   :  { %v384_v22 = vsub.f32 %v949_v10, %v953_v21 }
 0x2a1   :  { %v385_v24 = vmul.f32 1.442695, %v384_v22 }
 0x2a2   :  { %v475_v25 = vpop.f32.mrf.mxu1 }
 0x2a3   :  { %712 = vpow2.f32 %v385_v24  ;;  %v476_v26 = vadd.f32 %v475_v25, %v144_v23  ;;  %v275_v25 = vpop.xlane.xlu0 %274 }
 0x2a4   :  { %714 = vrcp.f32 %v864_v29 }
 0x2a5   :  { %v478_v27 = vmax.f32 %v476_v26, 0.0  ;;  %v276_v26 = vrot.slane %v275_v25, 4 }
 0x2a7   :  { %673 = vmatmul.msk.f32.vlgmr.msra.gmra.mxu2 %vm164_vm1, %v478_v27  ;;  %674 = vmatmul.msk.f32.vlgmr.msra.gmra.mxu3 %vm164_vm1, %v478_v27 }
 0x2a9   :  { %v713_v28 = vpop.eup %712 }
 0x2aa   :  { %387 = vadd.xlane.f32.xlu1 %v713_v28  ;;  %v715_v30 = vpop.eup %714  ;;  %v277_v28 = vadd.f32 %v276_v26, %v275_v25 }
 0x2ab   :  { %v263_v34 = vmul.f32 8.0, %v715_v30  ;;  %vm267_vm2 = vweird.f32 %v715_v30 }
 0x2ac   :  { %v278_v31 = vrot.slane %v277_v28, 2 }
 0x2ad   :  { %v264_v40 = vsub.f32 1.0, %v263_v34  ;;  %v420_v34 = vpop.xlane.xlu0 %419 }
 0x2af   :  { %v265_v43 = vmul.f32 %v715_v30, %v264_v40  ;;  %v421_v40 = vrot.slane %v420_v34, 4 }
 0x2b1   :  { %v266_v46 = vadd.f32 %v715_v30, %v265_v43 }
 0x2b3   :  { %v960_v50 = vsel %vm267_vm2, %v715_v30, %v266_v46 }
 0x31d   :  { %v388_v2 = vpop.xlane.xlu1 %387 }
 0x32a   :  { %v504_v35 = vpop.f32.mrf.mxu2  ;;  %v524_v36 = vpop.f32.mrf.mxu3 }
 0x32b   :  { %v505_v37 = vadd.f32 %v504_v35, %v480_v32  ;;  %v525_v39 = vadd.f32 %v524_v36, %v481_v33 }
 0x32d   :  { %596 = vst [vmem:[#allocation8] sm:$0xff] %v505_v37  ;;  %v597_v41 = vsel %vm164_vm1, %v525_v39, 0.0  ;;  %527 = vmax.xlane.f32.xlu2 %v505_v37  ;;  %v561_v59 = vsub.f32 %v525_v39, %v944_v4 }
 0x32e   :  { %v598_v42 = vrot.slane %v597_v41, 4  ;;  %635 = dma.vmem_to_hbm [thread:$0]  %s631_s18, 128, %s633_s16, [#allocation9]  }
 0x32f   :  { %v562_v60 = vmul.f32 %v561_v59, %v561_v59  ;;  %s621_s18 = sshll.u32 %s987_s4, 4  ;;  %s622_s18 = int_to_ptr.hbm [resolvable:$true] %s621_s18 }
 0x330   :  { %v599_v44 = vadd.f32 %v598_v42, %v597_v41 }
 0x331   :  { %v563_v62 = vsel %vm164_vm1, %v562_v60, 0.0 }
 0x332   :  { %v600_v45 = vrot.slane %v599_v44, 2 }
 0x334   :  { %v601_v47 = vadd.f32 %v600_v45, %v599_v44  ;;  %v422_v45 = vadd.f32 %v421_v40, %v420_v34 }
 0x336   :  { %v602_v49 = vrot.slane %v601_v47, 1 }
 0x338   :  { %v603_v51 = vadd.f32 %v602_v49, %v601_v47 }
 0x33a   :  { %v611_v52 = vmul.f32 %v603_v51, %v960_v50 }
 0x33c   :  { %613 = vst.msk [vmem:[#allocation10] sm:$0x1] %vm612_vm3, %v611_v52  ;;  %v423_v52 = vrot.slane %v422_v45, 2 }
 0x33d   :  { %646 = dma.vmem_to_hbm [thread:$0]  %s642_s23, 16, %s644_s21, [#allocation9]  }
 0x345   :  { %56 = vrot.lane.b32.xlu2 %v915_v6, %s865_s3 }
 0x3a0   :  { %v528_v53 = vpop.xlane.xlu2 %527 }
 0x3a1   :  { %v529_v54 = vsub.f32 %v505_v37, %v528_v53 }
 0x3a3   :  { %v530_v55 = vmul.f32 1.442695, %v529_v54 }
 0x3a5   :  { %716 = vpow2.f32 %v530_v55 }
 0x3a6   :  { %718 = vlog2.f32 %v242_v0 }
 0x3a7   :  { %720 = vlog2.f32 %v388_v2 }
 0x3a8   :  { %v57_v56 = vpop.permute.xlu2 %56 }
 0x3a9   :  { %v60_v57 = vsel %vm59_vm4, %v57_v56, 0.0 }
 0x3aa   :  { %61 = vadd.xlane.f32.xlu1 %v60_v57  ;;  %v246_v58 = vmul.f32 %v932_v38, %v60_v57  ;;  %v392_v6 = vmul.f32 %v949_v10, %v60_v57  ;;  %v537_v63 = vmul.f32 %v505_v37, %v60_v57  ;;  %v279_v37 = vadd.f32 %v278_v31, %v277_v28 }
 0x3ab   :  { %v717_v61 = vpop.eup %716  ;;  %v424_v57 = vadd.f32 %v423_v52, %v422_v45 }
 0x3ac   :  { %247 = vadd.xlane.f32.xlu2 %v246_v58  ;;  %v719_v1 = vpop.eup %718  ;;  %v280_v43 = vrot.slane %v279_v37, 1 }
 0x3ad   :  { %v244_v38 = vmul.f32 0.6931472, %v719_v1  ;;  %v721_v11 = vpop.eup %720 }
 0x3ae   :  { %v390_v12 = vmul.f32 0.6931472, %v721_v11  ;;  %v281_v49 = vadd.f32 %v280_v43, %v279_v37  ;;  %v869_v11 = vmov 3.0  }
 0x3af   :  { %v245_v3 = vadd.f32 %v244_v38, %v936_v48 }
 0x3b0   :  { %v391_v13 = vadd.f32 %v390_v12, %v953_v21  ;;  %v868_v21 = vmov 256.0  }
 0x3b2   :  { %532 = vadd.xlane.f32.xlu1 %v717_v61 }
 0x3b4   :  { %564 = vadd.xlane.f32.xlu2 %v563_v62 }
 0x3ba   :  { %393 = vadd.xlane.f32.xlu1 %v392_v6  ;;  %v425_v6 = vrot.slane %v424_v57, 1 }
 0x3c2   :  { %538 = vadd.xlane.f32.xlu1 %v537_v63 }
 0x41d   :  { %v62_v4 = vpop.xlane.xlu1 %61 }
 0x41e   :  { %v249_v5 = vmul.f32 %v245_v3, %v62_v4  ;;  %v395_v15 = vmul.f32 %v391_v13, %v62_v4  ;;  %v426_v3 = vadd.f32 %v425_v6, %v424_v57 }
 0x41f   :  { %v248_v7 = vpop.xlane.xlu2 %247 }
 0x420   :  { %v250_v8 = vsub.f32 %v249_v5, %v248_v7 }
 0x422   :  { %v252_v9 = vsel %vm251_vm5, %v250_v8, 0.0 }
 0x423   :  { %253 = vadd.xlane.f32.xlu1 %v252_v9 }
 0x425   :  { %v533_v10 = vpop.xlane.xlu1 %532 }
 0x426   :  { %722 = vlog2.f32 %v533_v10 }
 0x427   :  { %724 = vrcp.f32 %v868_v21  ;;  %v565_v46 = vpop.xlane.xlu2 %564 }
 0x428   :  { %726 = vrcp.f32 %v869_v11 }
 0x42c   :  { %v723_v14 = vpop.eup %722 }
 0x42d   :  { %v535_v16 = vmul.f32 0.6931472, %v723_v14  ;;  %v394_v17 = vpop.xlane.xlu1 %393  ;;  %v725_v27 = vpop.eup %724 }
 0x42e   :  { %v396_v48 = vsub.f32 %v395_v15, %v394_v17  ;;  %v284_v29 = vmul.f32 256.0, %v725_v27  ;;  %vm288_vm6 = vweird.f32 %v725_v27  ;;  %v727_v10 = vpop.eup %726 }
 0x42f   :  { %v536_v18 = vadd.f32 %v535_v16, %v528_v53  ;;  %v566_v53 = vrot.slane %v565_v46, 4  ;;  %v587_v12 = vmul.f32 3.0, %v727_v10  ;;  %vm591_vm7 = vweird.f32 %v727_v10 }
 0x430   :  { %v397_v19 = vsel %vm251_vm5, %v396_v48, 0.0  ;;  %v285_v33 = vsub.f32 1.0, %v284_v29 }
 0x431   :  { %398 = vadd.xlane.f32.xlu1 %v397_v19  ;;  %v540_v20 = vmul.f32 %v536_v18, %v62_v4  ;;  %v567_v58 = vadd.f32 %v566_v53, %v565_v46  ;;  %v588_v13 = vsub.f32 1.0, %v587_v12 }
 0x432   :  { %v286_v39 = vmul.f32 %v725_v27, %v285_v33 }
 0x433   :  { %v568_v61 = vrot.slane %v567_v58, 2  ;;  %v589_v14 = vmul.f32 %v727_v10, %v588_v13 }
 0x434   :  { %v287_v44 = vadd.f32 %v725_v27, %v286_v39 }
 0x435   :  { %v539_v22 = vpop.xlane.xlu1 %538  ;;  %v569_v38 = vadd.f32 %v568_v61, %v567_v58  ;;  %v590_v16 = vadd.f32 %v727_v10, %v589_v14 }
 0x436   :  { %v541_v23 = vsub.f32 %v540_v20, %v539_v22  ;;  %v289_v51 = vsel %vm288_vm6, %v725_v27, %v287_v44 }
 0x437   :  { %v570_v5 = vrot.slane %v569_v38, 1  ;;  %v592_v19 = vsel %vm591_vm7, %v727_v10, %v590_v16 }
 0x438   :  { %v542_v24 = vsel %vm251_vm5, %v541_v23, 0.0 }
 0x439   :  { %543 = vadd.xlane.f32.xlu1 %v542_v24  ;;  %v571_v9 = vadd.f32 %v570_v5, %v569_v38 }
 0x496   :  { %v254_v30 = vpop.xlane.xlu1 %253 }
 0x497   :  { %v255_v32 = vrot.slane %v254_v30, 4 }
 0x499   :  { %v256_v35 = vadd.f32 %v255_v32, %v254_v30 }
 0x49b   :  { %v257_v36 = vrot.slane %v256_v35, 2 }
 0x49d   :  { %v258_v41 = vadd.f32 %v257_v36, %v256_v35 }
 0x49f   :  { %v259_v42 = vrot.slane %v258_v41, 1 }
 0x4a1   :  { %v260_v47 = vadd.f32 %v259_v42, %v258_v41 }
 0x4a3   :  { %675 = vpush %v260_v47 }
 0x4a4   :  { %677 = vpush %v960_v50  ;;  %v399_v54 = vpop.xlane.xlu1 %398 }
 0x4a5   :  { %679 = vpush %v281_v49  ;;  %v400_v55 = vrot.slane %v399_v54, 4 }
 0x4a6   :  { %681 = vpush %v289_v51 }
 0x4a7   :  { %v401_v56 = vadd.f32 %v400_v55, %v399_v54 }
 0x4a9   :  { %v402_v59 = vrot.slane %v401_v56, 2 }
 0x4ab   :  { %v403_v60 = vadd.f32 %v402_v59, %v401_v56 }
 0x4ac   :  { %v544_v62 = vpop.xlane.xlu1 %543 }
 0x4ad   :  { %v545_v63 = vrot.slane %v544_v62, 4  ;;  %v404_v0 = vrot.slane %v403_v60, 1 }
 0x4af   :  { %v546_v1 = vadd.f32 %v545_v63, %v544_v62  ;;  %v405_v2 = vadd.f32 %v404_v0, %v403_v60 }
 0x4b1   :  { %v547_v4 = vrot.slane %v546_v1, 2  ;;  %683 = vpush %v405_v2 }
 0x4b2   :  { %685 = vpush %v426_v3 }
 0x4b3   :  { %v548_v50 = vadd.f32 %v547_v4, %v546_v1 }
 0x4b5   :  { %v549_v7 = vrot.slane %v548_v50, 1 }
 0x4b7   :  { %v550_v8 = vadd.f32 %v549_v7, %v548_v50 }
 0x4b9   :  { %687 = vpush %v550_v8 }
 0x4ba   :  { %689 = vpush %v571_v9 }
 0x4d4   :  { %s676_s5 = spop %675 }
 0x4d5   :  { %s678_s6 = spop %677 }
 0x4d6   :  { %s680_s24 = spop %679  ;;  %s270_s9 = smul.f32 %s678_s6, %s676_s5 }
 0x4d7   :  { %s682_s25 = spop %681 }
 0x4d8   :  { %s291_s27 = smul.f32 %s682_s25, %s680_s24 }
 0x4da   :  { %s292_s7 = smul.f32 0.5, %s291_s27 }
 0x4dc   :  { %s293_s11 = sadd.f32 %s292_s7, %s270_s9 }
 0x4de   :  { %v294_v17 = vstv %s293_s11 }
 0x4e2   :  { %s684_s26 = spop %683 }
 0x4e3   :  { %s686_s28 = spop %685  ;;  %s415_s8 = smul.f32 %s684_s26, %s678_s6 }
 0x4e4   :  { %s436_s29 = smul.f32 %s686_s28, %s682_s25 }
 0x4e6   :  { %s437_s30 = smul.f32 0.5, %s436_s29 }
 0x4e8   :  { %s438_s10 = sadd.f32 %s437_s30, %s415_s8 }
 0x4ea   :  { %s688_s1 = spop %687  ;;  %v439_v15 = vstv %s438_s10 }
 0x4eb   :  { %s690_s2 = spop %689  ;;  %s560_s13 = smul.f32 %s688_s1, %s678_s6  ;;  %v440_v48 = vadd.f32 %v439_v15, %v294_v17 }
 0x4ec   :  { %s581_s12 = smul.f32 %s690_s2, %s682_s25 }
 0x4ee   :  { %s582_s0 = smul.f32 0.5, %s581_s12 }
 0x4f0   :  { %s583_s3 = sadd.f32 %s582_s0, %s560_s13 }
 0x4f2   :  { %v584_v18 = vstv %s583_s3 }
 0x4f3   :  { %v585_v20 = vadd.f32 %v584_v18, %v440_v48 }
 0x4f5   :  { %v593_v22 = vmul.f32 %v592_v19, %v585_v20 }
 0x4f7   :  { %595 = vst.msk [vmem:[#allocation7] sm:$0x1] %vm594_vm8, %v593_v22 }
 0x4f8   :  { %624 = dma.vmem_to_hbm [thread:$0]  %s620_s15, 16, %s622_s18, [#allocation4]  }
 0x4f9   :  { %852 = dma.done.wait [#allocation4], 16  }
 0x4fa   :  { %853 = vsyncadd [#allocation4], 4294967280 }
 0x4fb   :  { %854 = dma.done.wait [#allocation9], 144  }
 0x4fc   :  { %855 = vsyncadd [#allocation9], 4294967152 }
 0x4fd   :  { %659 = vsyncpa [#allocation3], 1 }
 0x4fe   :  { %660 = vsyncpa [#allocation6], 1 }
 0x4ff   :  { %661 = vsyncpa [#allocation4], 1 }
 0x500   :  { %662 = vsyncpa [#allocation9], 1 }

</bundles_post_ra>
